<compile_context>
chip_gen: v6e
topology: v6e:2x2x1
jax: 0.10.0
libtpu: 0.0.40
codegen_flags: <defaults>
</compile_context>

<pallas_src>
import functools

import jax
import jax.numpy as jnp
from jax.experimental import pallas as pl
from jax.experimental.pallas import tpu as pltpu


def _round_up(x, m):
    return (x + m - 1) // m * m


# ---------------------------------------------------------------------------
# Batched matmul + bias: per-layer input projections and the hoisted vocab
# projection.  Fully parallel 2-D grid, weight-stationary iteration order.
# ---------------------------------------------------------------------------
def _matmul_bias_kernel(x_ref, w_ref, b_ref, o_ref):
    acc = jnp.dot(x_ref[...], w_ref[...], preferred_element_type=jnp.float32)
    o_ref[...] = (acc + b_ref[...].astype(jnp.float32)).astype(o_ref.dtype)


def matmul_bias(x, w, b, *, tm=256, tn=512, out_dtype=None):
    """(M, K) @ (K, N) + (1, N) -> (M, N).

    Ragged M / N handled via cdiv grids (Pallas pads edge blocks); K is kept
    whole (K is E or H here, small enough for VMEM).  Grid is (N-blocks,
    M-blocks) so the weight tile stays resident across the inner row sweep and
    W is streamed from HBM exactly once.
    """
    M, K = x.shape
    N = w.shape[1]
    out_dtype = out_dtype or x.dtype
    tm = min(tm, _round_up(M, 8))
    tn = min(tn, _round_up(N, 128))
    grid = (pl.cdiv(N, tn), pl.cdiv(M, tm))
    return pl.pallas_call(
        _matmul_bias_kernel,
        out_shape=jax.ShapeDtypeStruct((M, N), out_dtype),
        grid_spec=pltpu.PrefetchScalarGridSpec(
            num_scalar_prefetch=0,
            grid=grid,
            in_specs=[pl.BlockSpec((tm, K), lambda j, i: (i, 0)),
                      pl.BlockSpec((K, tn), lambda j, i: (0, j)),
                      pl.BlockSpec((1, tn), lambda j, i: (0, j))],
            out_specs=pl.BlockSpec((tm, tn), lambda j, i: (i, j)),
        ),
        compiler_params=pltpu.CompilerParams(
            dimension_semantics=("parallel", "parallel"),
            vmem_limit_bytes=56 << 20),
    )(x, w, b)


# ---------------------------------------------------------------------------
# LSTM recurrence for one layer: gx already contains x_t @ W_ih + (b_ih + b_hh).
# Grid = (batch-split [parallel], time-chunks [arbitrary]); h/c persist in f32
# VMEM scratch across time chunks, W_hh (constant block index) is DMA'd once.
# ---------------------------------------------------------------------------
def _lstm_recurrence_kernel(hidden_size, time_tile, seq_len, unroll,
                            gx_ref, whh_ref, hs_ref, h_scr, c_scr):
    H = hidden_size
    tblk = pl.program_id(1)

    @pl.when(tblk == 0)
    def _():
        # PyTorch nn.LSTM default zero initial state (per batch split).
        h_scr[...] = jnp.zeros_like(h_scr)
        c_scr[...] = jnp.zeros_like(c_scr)

    whh = whh_ref[...]                       # (H, 4H) bf16, loaded once / chunk

    def step(i, carry):
        h_prev, c_prev = carry               # f32 (Bs, H)
        gates = (gx_ref[i].astype(jnp.float32)
                 + jnp.dot(h_prev.astype(whh.dtype), whh,
                           preferred_element_type=jnp.float32))   # (Bs, 4H) f32
        # sigmoid(x) == 0.5*tanh(0.5*x) + 0.5 : one EUP push per gate.
        i_g = 0.5 * jnp.tanh(0.5 * gates[:, 0 * H:1 * H]) + 0.5
        f_g = 0.5 * jnp.tanh(0.5 * gates[:, 1 * H:2 * H]) + 0.5
        g_g = jnp.tanh(gates[:, 2 * H:3 * H])
        o_g = 0.5 * jnp.tanh(0.5 * gates[:, 3 * H:4 * H]) + 0.5
        c_new = f_g * c_prev + i_g * g_g
        h_new = o_g * jnp.tanh(c_new)
        hs_ref[i] = h_new.astype(hs_ref.dtype)
        return h_new, c_new

    carry0 = (h_scr[...], c_scr[...])
    if seq_len % time_tile == 0:
        # Static trip count -> partial unroll for LLO scheduling visibility.
        h_fin, c_fin = jax.lax.fori_loop(0, time_tile, step, carry0,
                                         unroll=unroll)
    else:
        n_steps = jnp.minimum(time_tile, seq_len - tblk * time_tile)
        h_fin, c_fin = jax.lax.fori_loop(0, n_steps, step, carry0)
    h_scr[...] = h_fin
    c_scr[...] = c_fin


def lstm_layer(gx, whh_t, *, time_tile=64, vmem_budget_bytes=40 << 20):
    """gx: (T, B, 4H) precomputed input gates; whh_t: (H, 4H) -> hs (T, B, H)."""
    Tseq, B, G = gx.shape
    H = whh_t.shape[0]

    # v7x: shard the (independent) batch across the two TensorCores when each
    # half stays a multiple of 8 sublanes.  No-op on v5e/v6e (single TC).
    nb = 2 if (B % 16 == 0) else 1
    Bs = B // nb

    # time_tile from the VMEM budget: 2x-buffered gx/hs chunks + 2x-buffered
    # constant W_hh + f32 h/c scratch must fit the scoped-VMEM limit.
    gx_item = jnp.dtype(gx.dtype).itemsize
    per_step = 2 * (Bs * G * gx_item + Bs * H * 2)          # gx + bf16 hs
    fixed = 2 * H * G * jnp.dtype(whh_t.dtype).itemsize + 2 * Bs * H * 4
    tt_cap = max(int((vmem_budget_bytes - fixed) // max(per_step, 1)), 1)
    tt = max(1, min(time_tile, Tseq, tt_cap))

    unroll = tt if tt <= 8 else 4            # modest unroll; limits vreg blow-up
    kernel = functools.partial(_lstm_recurrence_kernel, H, tt, Tseq, unroll)
    return pl.pallas_call(
        kernel,
        out_shape=jax.ShapeDtypeStruct((Tseq, B, H), jnp.bfloat16),
        grid_spec=pltpu.PrefetchScalarGridSpec(
            num_scalar_prefetch=0,
            grid=(nb, pl.cdiv(Tseq, tt)),
            in_specs=[
                pl.BlockSpec((tt, Bs, G), lambda b, t: (t, b, 0)),
                # Constant block index -> W_hh DMA'd only once per core.
                # TODO(synk): pipeline_mode=pl.Buffered(1) would also
                # single-buffer the resident weight on VMEM-tight v7x.
                pl.BlockSpec((H, G), lambda b, t: (0, 0)),
            ],
            out_specs=pl.BlockSpec((tt, Bs, H), lambda b, t: (t, b, 0)),
            scratch_shapes=[pltpu.VMEM((Bs, H), jnp.float32),   # h state
                            pltpu.VMEM((Bs, H), jnp.float32)],  # c state
        ),
        compiler_params=pltpu.CompilerParams(
            dimension_semantics=("parallel", "arbitrary"),
            vmem_limit_bytes=56 << 20),
    )(gx, whh_t)


# ---------------------------------------------------------------------------
# Wrapper: embedding lookup / concat are XLA glue; params packed once to bf16.
# ---------------------------------------------------------------------------
def pack_params(params, compute_dtype=jnp.bfloat16):
    """PyTorch-layout f32 params -> TPU-friendly packed bf16 layout (once)."""
    packed = {
        "embed": params["embed"].astype(compute_dtype),            # (V, E)
        "wout_t": params["wout"].T.astype(compute_dtype),           # (H, V)
        "bout_row": params["bout"][None, :].astype(jnp.float32),    # (1, V)
        "lstm": [],
    }
    for lw in params["lstm"]:
        packed["lstm"].append({
            "wih_t": lw["wih"].T.astype(compute_dtype),             # (in, 4H)
            "whh_t": lw["whh"].T.astype(compute_dtype),             # (H, 4H)
            "bias": (lw["bih"] + lw["bhh"])[None, :].astype(jnp.float32),
        })
    return packed


def decoder_rnn_forward(features, captions, packed):
    """features: (B, E) f32; captions: (T, B) int32 -> logits (T+1, B, V) f32."""
    emb = packed["embed"][captions]                        # (T, B, E) gather glue
    # TODO(synk): nn.Dropout(0.5) reproduced as eval-mode identity only;
    # training-mode stochastic dropout would need pltpu.prng_* masking.
    feats = features.astype(packed["embed"].dtype)
    x = jnp.concatenate([feats[None, ...], emb], axis=0)   # (T+1, B, E) bf16
    Tseq, B, E = x.shape
    H = packed["lstm"][0]["whh_t"].shape[0]
    V = packed["wout_t"].shape[1]

    inp2d = x.reshape(Tseq * B, E)
    for lw in packed["lstm"]:
        # Time-independent input projection: one batched parallel matmul.
        gx = matmul_bias(inp2d, lw["wih_t"], lw["bias"],
                         out_dtype=jnp.bfloat16)                   # (T*B, 4H)
        # Sequential part: only h @ W_hh + the cell update.
        hs = lstm_layer(gx.reshape(Tseq, B, 4 * H), lw["whh_t"])   # (T, B, H)
        inp2d = hs.reshape(Tseq * B, H)

    # Hoisted vocab projection: one (T+1)*B x H x V parallel matmul, f32 out.
    logits = matmul_bias(inp2d, packed["wout_t"], packed["bout_row"],
                         out_dtype=jnp.float32)
    return logits.reshape(Tseq, B, V)


# ---------------------------------------------------------------------------
# Pure-JAX f32 reference (PyTorch layout / semantics) for correctness checking.
# ---------------------------------------------------------------------------
def decoder_rnn_reference(features, captions, params):
    x = jnp.concatenate([features[None, ...], params["embed"][captions]], axis=0)
    B = x.shape[1]
    H = params["lstm"][0]["whh"].shape[1]
    inp = x
    for lw in params["lstm"]:
        def cell(carry, xt, lw=lw):
            h, c = carry
            gates = xt @ lw["wih"].T + lw["bih"] + h @ lw["whh"].T + lw["bhh"]
            i = jax.nn.sigmoid(gates[:, 0 * H:1 * H])
            f = jax.nn.sigmoid(gates[:, 1 * H:2 * H])
            g = jnp.tanh(gates[:, 2 * H:3 * H])
            o = jax.nn.sigmoid(gates[:, 3 * H:4 * H])
            c = f * c + i * g
            h = o * jnp.tanh(c)
            return (h, c), h

        init = (jnp.zeros((B, H), jnp.float32), jnp.zeros((B, H), jnp.float32))
        _, hs = jax.lax.scan(cell, init, inp)
        inp = hs
    return inp @ params["wout"].T + params["bout"]


def init_params(key, embed_size, hidden_size, vocab_size, num_layers):
    keys = jax.random.split(key, 3 + 4 * num_layers)
    s = 0.1
    params = {
        "embed": jax.random.uniform(keys[0], (vocab_size, embed_size),
                                    jnp.float32, -s, s),
        "wout": jax.random.uniform(keys[1], (vocab_size, hidden_size),
                                   jnp.float32, -s, s),
        "bout": jax.random.uniform(keys[2], (vocab_size,), jnp.float32, -s, s),
        "lstm": [],
    }
    for l in range(num_layers):
        in_size = embed_size if l == 0 else hidden_size
        k = keys[3 + 4 * l: 3 + 4 * (l + 1)]
        params["lstm"].append({
            "wih": jax.random.uniform(k[0], (4 * hidden_size, in_size),
                                      jnp.float32, -s, s),
            "whh": jax.random.uniform(k[1], (4 * hidden_size, hidden_size),
                                      jnp.float32, -s, s),
            "bih": jax.random.uniform(k[2], (4 * hidden_size,),
                                      jnp.float32, -s, s),
            "bhh": jax.random.uniform(k[3], (4 * hidden_size,),
                                      jnp.float32, -s, s),
        })
    return params


if __name__ == "__main__":
    EMBED, HIDDEN, VOCAB, LAYERS = 16, 32, 32, 2
    B, T = 2, 8

    root = jax.random.PRNGKey(0)
    kp, kf, kc = jax.random.split(root, 3)
    params = init_params(kp, EMBED, HIDDEN, VOCAB, LAYERS)
    packed = pack_params(params)                                   # pack once
    features = jax.random.normal(kf, (B, EMBED), jnp.float32)      # CNN features
    captions = jax.random.randint(kc, (T, B), 0, VOCAB, jnp.int32)

    out = decoder_rnn_forward(features, captions, packed)
    out = jax.block_until_ready(out)

    ref = decoder_rnn_reference(features, captions, params)
    assert out.shape == (T + 1, B, VOCAB), out.shape
    max_err = float(jnp.max(jnp.abs(out - ref)))
    # bf16 weights / activations (f32 accumulation + f32 h/c carry) -> looser
    # tolerance than the pure-f32 version, per review guidance.
    assert jnp.allclose(out, ref, rtol=2e-2, atol=2e-2), max_err

    print("KERNEL_OK")
</pallas_src>

<mosaic_0001>
module attributes {stable_mosaic.version = 11 : i64} {
  func.func @_matmul_bias_kernel(%arg0: i32, %arg1: i32, %arg2: memref<24x16xbf16, #tpu.memory_space<vmem>>, %arg3: memref<16x128xbf16, #tpu.memory_space<vmem>>, %arg4: memref<1x128xf32, #tpu.memory_space<vmem>>, %arg5: memref<24x128xbf16, #tpu.memory_space<vmem>>) attributes {dimension_semantics = [#tpu.dimension_semantics<parallel>, #tpu.dimension_semantics<parallel>], iteration_bounds = array<i64: 1, 1>, scalar_prefetch = 0 : i64, scratch_operands = 0 : i64, tpu.core_type = #tpu.core_type<tc>, window_params = [{transform_indices = @transform_0, window_bounds = array<i64: 24, 16>}, {transform_indices = @transform_1, window_bounds = array<i64: 16, 128>}, {transform_indices = @transform_2, window_bounds = array<i64: 1, 128>}, {transform_indices = @transform_3, window_bounds = array<i64: 24, 128>}]} {
    %c0 = arith.constant 0 : index
    %c0_0 = arith.constant 0 : index
    %0 = vector.load %arg2[%c0, %c0_0] : memref<24x16xbf16, #tpu.memory_space<vmem>>, vector<24x16xbf16>
    %c0_1 = arith.constant 0 : index
    %c0_2 = arith.constant 0 : index
    %1 = vector.load %arg3[%c0_1, %c0_2] : memref<16x128xbf16, #tpu.memory_space<vmem>>, vector<16x128xbf16>
    %cst = arith.constant dense<0.000000e+00> : vector<24x128xf32>
    %2 = tpu.matmul %0, %1, %cst {dimension_numbers = #tpu.dot_dimension_numbers<[1], [0], [0], [1], [0, 0, 1, 1], [], []>} : vector<24x16xbf16>, vector<16x128xbf16>, vector<24x128xf32> -> vector<24x128xf32>
    %c0_3 = arith.constant 0 : index
    %c0_4 = arith.constant 0 : index
    %3 = vector.load %arg4[%c0_3, %c0_4] : memref<1x128xf32, #tpu.memory_space<vmem>>, vector<1x128xf32>
    %4 = vector.broadcast %3 : vector<1x128xf32> to vector<24x128xf32>
    %5 = arith.addf %2, %4 : vector<24x128xf32>
    %6 = arith.truncf %5 : vector<24x128xf32> to vector<24x128xbf16>
    %c0_5 = arith.constant 0 : index
    %c0_6 = arith.constant 0 : index
    %7 = vector.load %arg5[%c0_5, %c0_6] : memref<24x128xbf16, #tpu.memory_space<vmem>>, vector<24x128xbf16>
    tpu.vector_store %arg5[%c0_5, %c0_6], %6 {strides = array<i32>} : memref<24x128xbf16, #tpu.memory_space<vmem>>, vector<24x128xbf16>,
    return
  }
  func.func @transform_0(%arg0: i32, %arg1: i32) -> (i32, i32) {
    %c0_i32 = arith.constant 0 : i32
    %c0_i32_0 = arith.constant 0 : i32
    return %arg1, %c0_i32 : i32, i32
  }
  func.func @transform_1(%arg0: i32, %arg1: i32) -> (i32, i32) {
    %c0_i32 = arith.constant 0 : i32
    %c0_i32_0 = arith.constant 0 : i32
    return %c0_i32, %arg0 : i32, i32
  }
  func.func @transform_2(%arg0: i32, %arg1: i32) -> (i32, i32) {
    %c0_i32 = arith.constant 0 : i32
    %c0_i32_0 = arith.constant 0 : i32
    return %c0_i32, %arg0 : i32, i32
  }
  func.func @transform_3(%arg0: i32, %arg1: i32) -> (i32, i32) {
    %c0_i32 = arith.constant 0 : i32
    return %arg1, %arg0 : i32, i32
  }
}

</mosaic_0001>

<bundles_post_ra>
// kernel: tpu_custom_call.1
= control target key start
LH: loop header
LB: loop body
LE: loop exit
PB: predicated region body
PF: predicated region fallthrough
CT: control target
= control target key end

     0   :  { %vm42_vm0 = vcmask 130048   ;;  %s221_s0 = inlined_call_operand.vmem [shape: bf16[18,16], index: 0, kind: input, shape index: {}]   ;;  %s222_s1 = inlined_call_operand.vmem [shape: bf16[16,128], index: 1, kind: input, shape index: {}]   ;;  %s223_s2 = inlined_call_operand.vmem [shape: f32[1,128], index: 2, kind: input, shape index: {}]   ;;  %s224_s3 = inlined_call_operand.hbm [shape: bf16[18,128], index: 3, kind: output, shape index: {}]  }
   0x1   :  { %v158_v0 = vld [vmem:[%s222_s1] sm:$0xff]   ;;  %v160_v2 = vld [vmem:[%s221_s0 + $0x8] ss:$0 sps:$4 sm:$0xff]  }
   0x2   :  { %v159_v1 = vld [vmem:[%s221_s0] sm:$0xff]   ;;  %149 = vmatprep.subr.bf16.mxu0 %v158_v0 }
   0x3   :  { %8 = vsyncpa [#allocation3], 0  ;;  %150 = vmatpush3.bf16.msra.mxu0 %v158_v0  ;;  %151 = vmatprep.mubr.msk.bf16.mxu0 %vm42_vm0, %v159_v1  ;;  %v129_v3 = vld [vmem:[%s223_s2] ss:$0 sm:$0xff]  ;;  %s183_s1 = smov [#allocation2]  }
   0x4   :  { %s118_s20 = sshll.u32 %s183_s1, 4  ;;  %s119_s20 = int_to_ptr.vmem [resolvable:$true] %s118_s20 }
   0x5   :  { %s161_s0 = scalar_lea.vmem %s119_s20, 192  ;;  %p166_p1 = scmp.lt.s32.totalorder %s119_s20, %s119_s20 }
   0x6   :  { %152 = vmatmul.mubr.msk.bf16.vlgmr.msra.gmra.mxu0 %vm42_vm0, %v160_v2  ;;  %p162_p0 = scmp.ne.s32.totalorder %s119_s20, %s161_s0  ;;  %p167_p2 = scmp.lt.s32.totalorder %s161_s0, %s161_s0 }
   0x8   :  { %p168_p3 = por %p167_p2, %p166_p1 }
   0xa   :  { %p169_p4 = pnand %p168_p3, %p162_p0 }
  0xc6   :  { %v153_v4 = vpop.f32.mrf.mxu0 }
  0xc7   :  { %v92_v5 = vadd.f32 %v153_v4, %v129_v3 }
  0xc8   :  { %v83_v6 = vpop.f32.mrf.mxu0 }
  0xc9   :  { %v140_v7 = vpack.c.bf16 %v92_v5, %v92_v5  ;;  %v84_v10 = vadd.f32 %v129_v3, %v83_v6 }
  0xca   :  { %v154_v8 = vpop.f32.mrf.mxu0 }
  0xcb   :  { %112 = vst [vmem:[#allocation2 + $0x8] sm:$0xf] %v140_v7 }
  0xcc   :  { %v86_v9 = vpop.f32.mrf.mxu0 }
  0xcd   :  { %v87_v11 = vadd.f32 %v129_v3, %v86_v9 }
  0xcf   :  { %v144_v12 = vpack.c.bf16 %v87_v11, %v84_v10 }
  0xd1   :  { %145 = vst [vmem:[#allocation2] sm:$0xff] %v144_v12  }
  0xd2   :  { %172 = shalt.err (!%p169_p4)
}
  0xd3   :  { %s184_s2 = smov 64   ;;  %s185_s21 = smov 4  }
  0xd4   :  { %124 = dma.vmem_to_hbm [thread:$0]  %s119_s20, 192, %s224_s3, [#allocation3], %s184_s2, %s184_s2, %s185_s21  }
  0xd5   :  { %181 = dma.done.wait [#allocation3], 192  }
  0xd6   :  { %182 = vsyncadd [#allocation3], 4294967104 }
  0xd7   :  { %128 = vsyncpa [#allocation3], 1 }

</bundles_post_ra>
